<compile_context>
chip_gen: v7x
topology: tpu7x:2x2x1
jax: 0.10.0
libtpu: 0.0.40
codegen_flags: <defaults>
</compile_context>

<pallas_src>
import functools

import jax
import jax.numpy as jnp
from jax import lax
from jax.experimental import pallas as pl
from jax.experimental.pallas import tpu as pltpu


# ----------------------------------------------------------------------------
# Kernel
# ----------------------------------------------------------------------------
def _update_kernel(g_ref, b_ref, m_ref, h_ref,
                   wih_ref, whh_ref, bih_ref, bhh_ref, o_ref,
                   *, n_edge_types: int, ms: int, hs: int,
                   bt: int, n: int, sender_chunk: int, ew_dtype):
    rows = bt * n
    n_chunks = n // sender_chunk

    def accumulate(s0, parts):
        """Consume one sender chunk for all edge types (m chunk loaded once)."""
        sl = pl.ds(s0, sender_chunk)
        m_c = m_ref[:, sl, :, :].astype(ew_dtype)        # (bt, cs, n, ms)  lazy cast
        g_c = g_ref[:, sl, :].astype(ew_dtype)           # (bt, cs, n)
        new_parts = []
        for i in range(n_edge_types):                    # static, E = 5 (inner loop)
            w = g_c * b_ref[:, i, sl, :].astype(ew_dtype)      # (bt, cs, n) mask * gate
            prod = w[..., None] * m_c                          # (bt, cs, n, ms)
            contrib = jnp.sum(prod, axis=1)                    # chunk-local sum over senders
            new_parts.append(parts[i] + contrib.astype(jnp.float32))   # f32 accumulate
        return tuple(new_parts)

    parts0 = tuple(jnp.zeros((bt, n, ms), jnp.float32) for _ in range(n_edge_types))
    if n_chunks == 1:
        parts = accumulate(0, parts0)
    else:
        def body(c, parts):
            s0 = pl.multiple_of(c * sender_chunk, sender_chunk)
            return accumulate(s0, parts)
        parts = lax.fori_loop(0, n_chunks, body, parts0, unroll=(n_chunks <= 8))

    # ---- GRU cell (PyTorch nn.GRU gate order: r, z, n) ----------------------
    # One K = E*ms matmul for the input path (merges the 5 per-edge matmuls),
    # one K = hs matmul for the hidden path.  f32 accumulation on the MXU.
    part_2d = jnp.concatenate(parts, axis=-1).reshape(rows, n_edge_types * ms)
    h2d = h_ref[...].reshape(rows, hs)                              # f32

    gi = jnp.dot(part_2d.astype(wih_ref.dtype), wih_ref[...],
                 preferred_element_type=jnp.float32) + bih_ref[...]
    gh = jnp.dot(h2d.astype(whh_ref.dtype), whh_ref[...],
                 preferred_element_type=jnp.float32) + bhh_ref[...]

    r = jax.nn.sigmoid(gi[:, 0 * hs:1 * hs] + gh[:, 0 * hs:1 * hs])
    z = jax.nn.sigmoid(gi[:, 1 * hs:2 * hs] + gh[:, 1 * hs:2 * hs])
    ngate = jnp.tanh(gi[:, 2 * hs:3 * hs] + r * gh[:, 2 * hs:3 * hs])
    h_new = (1.0 - z) * ngate + z * h2d                             # (rows, hs)

    o_ref[...] = h_new.reshape(bt, n, hs).astype(o_ref.dtype)


# ----------------------------------------------------------------------------
# Wrapper helpers
# ----------------------------------------------------------------------------
def _device_kind():
    try:
        return jax.devices()[0].device_kind.lower()
    except Exception:
        return ""


def _choose_block_b(B, N, target_rows):
    """Largest Bt dividing B with roughly Bt*N <= target_rows, but keeping at
    least 2 grid steps when B >= 2 (v7x has 2 TensorCores to shard over)."""
    bt = max(1, min(B, max(1, target_rows // max(N, 1))))
    while B % bt:
        bt -= 1
    if B >= 2 and B // bt < 2:
        bt = max(1, B // 2)
        while B % bt:
            bt -= 1
    return bt


def _choose_sender_chunk(N, bt, ms, elem_bytes, target_bytes=1 << 20):
    """Sender-chunk size: divides N, stays a multiple of 8 (sublane aligned),
    keeps the resident m chunk around ~1 MiB to bound vreg/VMEM live ranges."""
    cs = N
    while cs % 2 == 0 and (cs // 2) % 8 == 0 and bt * cs * N * ms * elem_bytes > target_bytes:
        cs //= 2
    return cs


# ----------------------------------------------------------------------------
# Public wrapper
# ----------------------------------------------------------------------------
def specialised_update_option2(g, b, m, h, w_ih, w_hh, b_ih, b_hh, *,
                               elementwise_dtype=None,
                               matmul_dtype=jnp.bfloat16,
                               block_b=None, sender_chunk=None):
    """Forward pass of SpecialisedUpdateFunctionOption2.

    g:(B,N,N) f32, b:(B,N,N,E) bond indicators (PyTorch layout, any numeric
    dtype; `== 1` semantics preserved), m:(B,N,N,ms) (f32 or bf16),
    h:(B,N,hs) f32.  GRU params in PyTorch nn.GRU layout:
    w_ih:(3hs, E*ms), w_hh:(3hs, hs), b_ih/b_hh:(3hs,).  Returns (B,N,hs) f32.
    """
    B, N, _ = g.shape
    E = b.shape[-1]
    ms = m.shape[-1]
    hs = h.shape[-1]
    in_m = E * ms
    assert w_ih.shape == (3 * hs, in_m) and w_hh.shape == (3 * hs, hs)

    kind = _device_kind()
    is_v5e = ("v5 lite" in kind) or ("v5e" in kind) or ("v5litepod" in kind)
    is_v7 = ("v7" in kind) or ("7x" in kind)
    if elementwise_dtype is None:
        # v5e VPU has no bf16 fast path -> keep the masked product in f32 there;
        # bf16 elementwise on v6e/v7x (f32 accumulation either way).
        elementwise_dtype = jnp.float32 if is_v5e else jnp.bfloat16

    # Exact PyTorch `(b == 1).float()` semantics; edge-type-major int8 layout so
    # the kernel slices one (N, N) mask per edge type.  (At N << 128 the int8
    # (32,128) VMEM tiling pads heavily; acceptable here, moot at N >= 128.)
    b_ind = (b == 1).astype(jnp.int8).transpose(0, 3, 1, 2)          # (B, E, N, N)

    # GRU params transposed for x @ W^T; weights in the MXU operand dtype
    # (bf16 by default — required to hit bf16 MXU peak on all generations).
    wih_t = jnp.asarray(w_ih).T.astype(matmul_dtype)                 # (E*ms, 3hs)
    whh_t = jnp.asarray(w_hh).T.astype(matmul_dtype)                 # (hs, 3hs)
    bih2 = jnp.asarray(b_ih, jnp.float32).reshape(1, 3 * hs)
    bhh2 = jnp.asarray(b_hh, jnp.float32).reshape(1, 3 * hs)

    # Batch-group size: fill the MXU M dimension (256 rows on v5e's 128-wide
    # MXU, 512 on v6e/v7x), while keeping >= 2 grid steps for megacore.
    target_rows = 256 if "v5" in kind else 512
    bt = block_b if block_b is not None else _choose_block_b(B, N, target_rows)
    assert B % bt == 0
    grid = (B // bt,)

    cs = sender_chunk if sender_chunk is not None else _choose_sender_chunk(
        N, bt, ms, jnp.dtype(m.dtype).itemsize)
    assert N % cs == 0

    kernel = functools.partial(
        _update_kernel, n_edge_types=E, ms=ms, hs=hs, bt=bt, n=N,
        sender_chunk=cs, ew_dtype=elementwise_dtype)

    # ---- scoped-VMEM sizing (generation aware) ------------------------------
    itemsize = lambda x: jnp.dtype(x.dtype).itemsize
    blk_bytes = (bt * N * N * itemsize(g)            # g block
                 + bt * E * N * N                    # b block (int8)
                 + bt * N * N * ms * itemsize(m)     # m block
                 + bt * N * hs * itemsize(h)         # h block
                 + bt * N * hs * 4)                  # output block
    w_bytes = (in_m + hs) * 3 * hs * jnp.dtype(matmul_dtype).itemsize + 2 * 3 * hs * 4
    est = 2 * blk_bytes + w_bytes + (4 << 20)
    scoped_default = (16 << 20) if is_v5e else (32 << 20)
    vmem_cap = (48 << 20) if is_v7 else (96 << 20)   # never request all of v7x's 64 MiB
    compiler_kwargs = dict(dimension_semantics=("parallel",))
    if est > scoped_default:
        compiler_kwargs["vmem_limit_bytes"] = int(min(est, vmem_cap))
    # At production N, if 2*blk_bytes exceeds ~vmem_cap/3, prefer adding a
    # sender-axis reduction grid dim ("arbitrary") over raising the limit.

    single_buffer = pl.Buffered(1)   # grid-invariant weights: no double buffer

    out = pl.pallas_call(
        kernel,
        out_shape=jax.ShapeDtypeStruct((B, N, hs), jnp.float32),
        grid=grid,
        in_specs=[
            pl.BlockSpec((bt, N, N), lambda i: (i, 0, 0)),              # g   f32
            pl.BlockSpec((bt, E, N, N), lambda i: (i, 0, 0, 0)),        # b   int8 indicator
            pl.BlockSpec((bt, N, N, ms), lambda i: (i, 0, 0, 0)),       # m   (bf16/f32)
            pl.BlockSpec((bt, N, hs), lambda i: (i, 0, 0)),             # h   f32
            pl.BlockSpec((in_m, 3 * hs), lambda i: (0, 0),
                         pipeline_mode=single_buffer),                  # W_ih^T
            pl.BlockSpec((hs, 3 * hs), lambda i: (0, 0),
                         pipeline_mode=single_buffer),                  # W_hh^T
            pl.BlockSpec((1, 3 * hs), lambda i: (0, 0)),                # b_ih
            pl.BlockSpec((1, 3 * hs), lambda i: (0, 0)),                # b_hh
        ],
        out_specs=pl.BlockSpec((bt, N, hs), lambda i: (i, 0, 0)),
        compiler_params=pltpu.CompilerParams(**compiler_kwargs),
    )(g, b_ind, m, h, wih_t, whh_t, bih2, bhh2)
    return out


# ----------------------------------------------------------------------------
# Pure-JAX reference (mirrors the PyTorch forward, b in PyTorch layout)
# ----------------------------------------------------------------------------
def reference_jax(g, b, m, h, w_ih, w_hh, b_ih, b_hh):
    E = b.shape[-1]
    hs = h.shape[-1]
    parts = []
    for i in range(E):
        mb = (b[..., i] == 1).astype(jnp.float32)[..., None] * m     # (B,N,N,ms)
        mb = g[..., None] * mb
        parts.append(mb.sum(axis=1))                                  # (B,N,ms)
    m_tb = jnp.concatenate(parts, axis=2)                             # (B,N,E*ms)

    x = m_tb.reshape(-1, m_tb.shape[-1])
    hh = h.reshape(-1, hs)
    gi = x @ w_ih.T + b_ih
    gh = hh @ w_hh.T + b_hh
    r = jax.nn.sigmoid(gi[:, :hs] + gh[:, :hs])
    z = jax.nn.sigmoid(gi[:, hs:2 * hs] + gh[:, hs:2 * hs])
    n = jnp.tanh(gi[:, 2 * hs:] + r * gh[:, 2 * hs:])
    h_new = (1.0 - z) * n + z * hh
    return h_new.reshape(h.shape)


if __name__ == "__main__":
    B, N, ms, E, hs = 2, 8, 4, 5, 32
    in_m = ms * E

    key = jax.random.PRNGKey(0)
    kg, kb, km, kh, k1, k2, k3, k4 = jax.random.split(key, 8)

    g = jax.random.uniform(kg, (B, N, N), dtype=jnp.float32)                # edge gates
    b = (jax.random.uniform(kb, (B, N, N, E)) > 0.5).astype(jnp.float32)    # bond indicators
    m_f32 = jax.random.normal(km, (B, N, N, ms), dtype=jnp.float32)         # messages
    h = jax.random.normal(kh, (B, N, hs), dtype=jnp.float32)                # node hidden

    # PyTorch nn.GRU init: U(-1/sqrt(hs), 1/sqrt(hs))
    s = 1.0 / jnp.sqrt(jnp.float32(hs))
    w_ih = jax.random.uniform(k1, (3 * hs, in_m), minval=-s, maxval=s, dtype=jnp.float32)
    w_hh = jax.random.uniform(k2, (3 * hs, hs), minval=-s, maxval=s, dtype=jnp.float32)
    b_ih = jax.random.uniform(k3, (3 * hs,), minval=-s, maxval=s, dtype=jnp.float32)
    b_hh = jax.random.uniform(k4, (3 * hs,), minval=-s, maxval=s, dtype=jnp.float32)

    # Messages stored as bf16 for HBM bandwidth; reference sees exactly the
    # bf16-quantized messages the kernel sees, so the f32-path check is tight.
    m_bf16 = m_f32.astype(jnp.bfloat16)
    ref = reference_jax(g, b, m_bf16.astype(jnp.float32), h, w_ih, w_hh, b_ih, b_hh)

    # 1) Exact-compute path (f32 elementwise + f32 MXU operands): tight check.
    out_exact = specialised_update_option2(
        g, b, m_bf16, h, w_ih, w_hh, b_ih, b_hh,
        elementwise_dtype=jnp.float32, matmul_dtype=jnp.float32)
    out_exact = jax.block_until_ready(out_exact)
    assert out_exact.shape == (B, N, hs)
    err = jnp.max(jnp.abs(out_exact - ref))
    assert jnp.allclose(out_exact, ref, atol=1e-4, rtol=1e-4), f"f32 path max abs err {err}"

    # 2) Default fast path (bf16 elementwise on v6e/v7x, bf16 MXU operands
    #    everywhere, f32 accumulation): bf16-rounding-level tolerance.
    out_fast = jax.block_until_ready(
        specialised_update_option2(g, b, m_bf16, h, w_ih, w_hh, b_ih, b_hh))
    err_fast = jnp.max(jnp.abs(out_fast - ref))
    assert jnp.allclose(out_fast, ref, atol=5e-2, rtol=5e-2), f"fast path max abs err {err_fast}"

    print("KERNEL_OK")
</pallas_src>

<mosaic_0001>
module attributes {stable_mosaic.version = 11 : i64} {
  func.func @_update_kernel(%arg0: i32, %arg1: memref<1x8x8xf32, #tpu.memory_space<vmem>>, %arg2: memref<1x5x8x8xi8, #tpu.memory_space<vmem>>, %arg3: memref<1x8x8x4xbf16, #tpu.memory_space<vmem>>, %arg4: memref<1x8x32xf32, #tpu.memory_space<vmem>>, %arg5: memref<20x96xf32, #tpu.memory_space<vmem>>, %arg6: memref<32x96xf32, #tpu.memory_space<vmem>>, %arg7: memref<1x96xf32, #tpu.memory_space<vmem>>, %arg8: memref<1x96xf32, #tpu.memory_space<vmem>>, %arg9: memref<1x8x32xf32, #tpu.memory_space<vmem>>) attributes {dimension_semantics = [#tpu.dimension_semantics<parallel>], iteration_bounds = array<i64: 2>, scalar_prefetch = 0 : i64, scratch_operands = 0 : i64, tpu.core_type = #tpu.core_type<tc>, window_params = [{transform_indices = @transform_0, window_bounds = array<i64: 1, 8, 8>}, {transform_indices = @transform_1, window_bounds = array<i64: 1, 5, 8, 8>}, {transform_indices = @transform_2, window_bounds = array<i64: 1, 8, 8, 4>}, {transform_indices = @transform_3, window_bounds = array<i64: 1, 8, 32>}, {pipeline_mode = #tpu.pipeline_mode<synchronous>, transform_indices = @transform_4, window_bounds = array<i64: 20, 96>}, {pipeline_mode = #tpu.pipeline_mode<synchronous>, transform_indices = @transform_5, window_bounds = array<i64: 32, 96>}, {pipeline_mode = #tpu.pipeline_mode<synchronous>, transform_indices = @transform_6, window_bounds = array<i64: 1, 96>}, {pipeline_mode = #tpu.pipeline_mode<synchronous>, transform_indices = @transform_7, window_bounds = array<i64: 1, 96>}, {transform_indices = @transform_8, window_bounds = array<i64: 1, 8, 32>}]} {
    %cst = arith.constant 0.000000e+00 : f32
    %0 = vector.broadcast %cst : f32 to vector<1x8x4xf32>
    %cst_0 = arith.constant 0.000000e+00 : f32
    %1 = vector.broadcast %cst_0 : f32 to vector<1x8x4xf32>
    %cst_1 = arith.constant 0.000000e+00 : f32
    %2 = vector.broadcast %cst_1 : f32 to vector<1x8x4xf32>
    %cst_2 = arith.constant 0.000000e+00 : f32
    %3 = vector.broadcast %cst_2 : f32 to vector<1x8x4xf32>
    %cst_3 = arith.constant 0.000000e+00 : f32
    %4 = vector.broadcast %cst_3 : f32 to vector<1x8x4xf32>
    %c0 = arith.constant 0 : index
    %c0_4 = arith.constant 0 : index
    %c0_5 = arith.constant 0 : index
    %c0_6 = arith.constant 0 : index
    %5 = vector.load %arg3[%c0, %c0_4, %c0_5, %c0_6] : memref<1x8x8x4xbf16, #tpu.memory_space<vmem>>, vector<1x8x8x4xbf16>
    %6 = arith.extf %5 : vector<1x8x8x4xbf16> to vector<1x8x8x4xf32>
    %c0_7 = arith.constant 0 : index
    %c0_8 = arith.constant 0 : index
    %c0_9 = arith.constant 0 : index
    %7 = vector.load %arg1[%c0_7, %c0_8, %c0_9] : memref<1x8x8xf32, #tpu.memory_space<vmem>>, vector<1x8x8xf32>
    %c0_10 = arith.constant 0 : index
    %c0_11 = arith.constant 0 : index
    %c0_12 = arith.constant 0 : index
    %c0_13 = arith.constant 0 : index
    %8 = vector.load %arg2[%c0_10, %c0_11, %c0_12, %c0_13] : memref<1x5x8x8xi8, #tpu.memory_space<vmem>>, vector<1x1x8x8xi8>
    %9 = vector.shape_cast %8 : vector<1x1x8x8xi8> to vector<1x8x8xi8>
    %10 = arith.sitofp %9 : vector<1x8x8xi8> to vector<1x8x8xf32>
    %11 = arith.mulf %7, %10 : vector<1x8x8xf32>
    %12 = vector.shape_cast %11 : vector<1x8x8xf32> to vector<1x8x8x1xf32>
    %13 = vector.broadcast %12 : vector<1x8x8x1xf32> to vector<1x8x8x4xf32>
    %14 = arith.mulf %13, %6 : vector<1x8x8x4xf32>
    %cst_14 = arith.constant dense<0.000000e+00> : vector<1x8x4xf32>
    %15 = vector.multi_reduction <add>, %14, %cst_14 [1] : vector<1x8x8x4xf32> to vector<1x8x4xf32>
    %16 = arith.addf %0, %15 : vector<1x8x4xf32>
    %c0_15 = arith.constant 0 : index
    %c1 = arith.constant 1 : index
    %c0_16 = arith.constant 0 : index
    %c0_17 = arith.constant 0 : index
    %17 = vector.load %arg2[%c0_15, %c1, %c0_16, %c0_17] : memref<1x5x8x8xi8, #tpu.memory_space<vmem>>, vector<1x1x8x8xi8>
    %18 = vector.shape_cast %17 : vector<1x1x8x8xi8> to vector<1x8x8xi8>
    %19 = arith.sitofp %18 : vector<1x8x8xi8> to vector<1x8x8xf32>
    %20 = arith.mulf %7, %19 : vector<1x8x8xf32>
    %21 = vector.shape_cast %20 : vector<1x8x8xf32> to vector<1x8x8x1xf32>
    %22 = vector.broadcast %21 : vector<1x8x8x1xf32> to vector<1x8x8x4xf32>
    %23 = arith.mulf %22, %6 : vector<1x8x8x4xf32>
    %cst_18 = arith.constant dense<0.000000e+00> : vector<1x8x4xf32>
    %24 = vector.multi_reduction <add>, %23, %cst_18 [1] : vector<1x8x8x4xf32> to vector<1x8x4xf32>
    %25 = arith.addf %1, %24 : vector<1x8x4xf32>
    %c0_19 = arith.constant 0 : index
    %c2 = arith.constant 2 : index
    %c0_20 = arith.constant 0 : index
    %c0_21 = arith.constant 0 : index
    %26 = vector.load %arg2[%c0_19, %c2, %c0_20, %c0_21] : memref<1x5x8x8xi8, #tpu.memory_space<vmem>>, vector<1x1x8x8xi8>
    %27 = vector.shape_cast %26 : vector<1x1x8x8xi8> to vector<1x8x8xi8>
    %28 = arith.sitofp %27 : vector<1x8x8xi8> to vector<1x8x8xf32>
    %29 = arith.mulf %7, %28 : vector<1x8x8xf32>
    %30 = vector.shape_cast %29 : vector<1x8x8xf32> to vector<1x8x8x1xf32>
    %31 = vector.broadcast %30 : vector<1x8x8x1xf32> to vector<1x8x8x4xf32>
    %32 = arith.mulf %31, %6 : vector<1x8x8x4xf32>
    %cst_22 = arith.constant dense<0.000000e+00> : vector<1x8x4xf32>
    %33 = vector.multi_reduction <add>, %32, %cst_22 [1] : vector<1x8x8x4xf32> to vector<1x8x4xf32>
    %34 = arith.addf %2, %33 : vector<1x8x4xf32>
    %c0_23 = arith.constant 0 : index
    %c3 = arith.constant 3 : index
    %c0_24 = arith.constant 0 : index
    %c0_25 = arith.constant 0 : index
    %35 = vector.load %arg2[%c0_23, %c3, %c0_24, %c0_25] : memref<1x5x8x8xi8, #tpu.memory_space<vmem>>, vector<1x1x8x8xi8>
    %36 = vector.shape_cast %35 : vector<1x1x8x8xi8> to vector<1x8x8xi8>
    %37 = arith.sitofp %36 : vector<1x8x8xi8> to vector<1x8x8xf32>
    %38 = arith.mulf %7, %37 : vector<1x8x8xf32>
    %39 = vector.shape_cast %38 : vector<1x8x8xf32> to vector<1x8x8x1xf32>
    %40 = vector.broadcast %39 : vector<1x8x8x1xf32> to vector<1x8x8x4xf32>
    %41 = arith.mulf %40, %6 : vector<1x8x8x4xf32>
    %cst_26 = arith.constant dense<0.000000e+00> : vector<1x8x4xf32>
    %42 = vector.multi_reduction <add>, %41, %cst_26 [1] : vector<1x8x8x4xf32> to vector<1x8x4xf32>
    %43 = arith.addf %3, %42 : vector<1x8x4xf32>
    %c0_27 = arith.constant 0 : index
    %c4 = arith.constant 4 : index
    %c0_28 = arith.constant 0 : index
    %c0_29 = arith.constant 0 : index
    %44 = vector.load %arg2[%c0_27, %c4, %c0_28, %c0_29] : memref<1x5x8x8xi8, #tpu.memory_space<vmem>>, vector<1x1x8x8xi8>
    %45 = vector.shape_cast %44 : vector<1x1x8x8xi8> to vector<1x8x8xi8>
    %46 = arith.sitofp %45 : vector<1x8x8xi8> to vector<1x8x8xf32>
    %47 = arith.mulf %7, %46 : vector<1x8x8xf32>
    %48 = vector.shape_cast %47 : vector<1x8x8xf32> to vector<1x8x8x1xf32>
    %49 = vector.broadcast %48 : vector<1x8x8x1xf32> to vector<1x8x8x4xf32>
    %50 = arith.mulf %49, %6 : vector<1x8x8x4xf32>
    %cst_30 = arith.constant dense<0.000000e+00> : vector<1x8x4xf32>
    %51 = vector.multi_reduction <add>, %50, %cst_30 [1] : vector<1x8x8x4xf32> to vector<1x8x4xf32>
    %52 = arith.addf %4, %51 : vector<1x8x4xf32>
    %53 = tpu.concatenate %16, %25, %34, %43, %52 in 2 : vector<1x8x4xf32>, vector<1x8x4xf32>, vector<1x8x4xf32>, vector<1x8x4xf32>, vector<1x8x4xf32> -> vector<1x8x20xf32>
    %54 = vector.shape_cast %53 : vector<1x8x20xf32> to vector<8x20xf32>
    %c0_31 = arith.constant 0 : index
    %c0_32 = arith.constant 0 : index
    %c0_33 = arith.constant 0 : index
    %55 = vector.load %arg4[%c0_31, %c0_32, %c0_33] : memref<1x8x32xf32, #tpu.memory_space<vmem>>, vector<1x8x32xf32>
    %56 = vector.shape_cast %55 : vector<1x8x32xf32> to vector<8x32xf32>
    %c0_34 = arith.constant 0 : index
    %c0_35 = arith.constant 0 : index
    %57 = vector.load %arg5[%c0_34, %c0_35] : memref<20x96xf32, #tpu.memory_space<vmem>>, vector<20x96xf32>
    %cst_36 = arith.constant dense<0.000000e+00> : vector<8x96xf32>
    %58 = tpu.matmul %54, %57, %cst_36 {dimension_numbers = #tpu.dot_dimension_numbers<[1], [0], [0], [1], [0, 0, 1, 1], [], []>} : vector<8x20xf32>, vector<20x96xf32>, vector<8x96xf32> -> vector<8x96xf32>
    %c0_37 = arith.constant 0 : index
    %c0_38 = arith.constant 0 : index
    %59 = vector.load %arg7[%c0_37, %c0_38] : memref<1x96xf32, #tpu.memory_space<vmem>>, vector<1x96xf32>
    %60 = vector.broadcast %59 : vector<1x96xf32> to vector<8x96xf32>
    %61 = arith.addf %58, %60 : vector<8x96xf32>
    %c0_39 = arith.constant 0 : index
    %c0_40 = arith.constant 0 : index
    %62 = vector.load %arg6[%c0_39, %c0_40] : memref<32x96xf32, #tpu.memory_space<vmem>>, vector<32x96xf32>
    %cst_41 = arith.constant dense<0.000000e+00> : vector<8x96xf32>
    %63 = tpu.matmul %56, %62, %cst_41 {dimension_numbers = #tpu.dot_dimension_numbers<[1], [0], [0], [1], [0, 0, 1, 1], [], []>} : vector<8x32xf32>, vector<32x96xf32>, vector<8x96xf32> -> vector<8x96xf32>
    %c0_42 = arith.constant 0 : index
    %c0_43 = arith.constant 0 : index
    %64 = vector.load %arg8[%c0_42, %c0_43] : memref<1x96xf32, #tpu.memory_space<vmem>>, vector<1x96xf32>
    %65 = vector.broadcast %64 : vector<1x96xf32> to vector<8x96xf32>
    %66 = arith.addf %63, %65 : vector<8x96xf32>
    %67 = vector.extract_strided_slice %61 {offsets = [0, 0], sizes = [8, 32], strides = [1, 1]} : vector<8x96xf32> to vector<8x32xf32>
    %68 = vector.extract_strided_slice %66 {offsets = [0, 0], sizes = [8, 32], strides = [1, 1]} : vector<8x96xf32> to vector<8x32xf32>
    %69 = arith.addf %67, %68 : vector<8x32xf32>
    %70 = arith.negf %69 : vector<8x32xf32>
    %71 = math.exp %70 : vector<8x32xf32>
    %cst_44 = arith.constant 1.000000e+00 : f32
    %72 = vector.broadcast %cst_44 : f32 to vector<8x32xf32>
    %73 = arith.addf %72, %71 : vector<8x32xf32>
    %74 = arith.divf %72, %73 : vector<8x32xf32>
    %75 = vector.extract_strided_slice %61 {offsets = [0, 32], sizes = [8, 32], strides = [1, 1]} : vector<8x96xf32> to vector<8x32xf32>
    %76 = vector.extract_strided_slice %66 {offsets = [0, 32], sizes = [8, 32], strides = [1, 1]} : vector<8x96xf32> to vector<8x32xf32>
    %77 = arith.addf %75, %76 : vector<8x32xf32>
    %78 = arith.negf %77 : vector<8x32xf32>
    %79 = math.exp %78 : vector<8x32xf32>
    %cst_45 = arith.constant 1.000000e+00 : f32
    %80 = vector.broadcast %cst_45 : f32 to vector<8x32xf32>
    %81 = arith.addf %80, %79 : vector<8x32xf32>
    %82 = arith.divf %80, %81 : vector<8x32xf32>
    %83 = vector.extract_strided_slice %61 {offsets = [0, 64], sizes = [8, 32], strides = [1, 1]} : vector<8x96xf32> to vector<8x32xf32>
    %84 = vector.extract_strided_slice %66 {offsets = [0, 64], sizes = [8, 32], strides = [1, 1]} : vector<8x96xf32> to vector<8x32xf32>
    %85 = arith.mulf %74, %84 : vector<8x32xf32>
    %86 = arith.addf %83, %85 : vector<8x32xf32>
    %87 = math.tanh %86 : vector<8x32xf32>
    %cst_46 = arith.constant 1.000000e+00 : f32
    %88 = vector.broadcast %cst_46 : f32 to vector<8x32xf32>
    %89 = arith.subf %88, %82 : vector<8x32xf32>
    %90 = arith.mulf %89, %87 : vector<8x32xf32>
    %91 = arith.mulf %82, %56 : vector<8x32xf32>
    %92 = arith.addf %90, %91 : vector<8x32xf32>
    %93 = vector.shape_cast %92 : vector<8x32xf32> to vector<1x8x32xf32>
    %c0_47 = arith.constant 0 : index
    %c0_48 = arith.constant 0 : index
    %c0_49 = arith.constant 0 : index
    %94 = vector.load %arg9[%c0_47, %c0_48, %c0_49] : memref<1x8x32xf32, #tpu.memory_space<vmem>>, vector<1x8x32xf32>
    tpu.vector_store %arg9[%c0_47, %c0_48, %c0_49], %93 {strides = array<i32>} : memref<1x8x32xf32, #tpu.memory_space<vmem>>, vector<1x8x32xf32>,
    return
  }
  func.func @transform_0(%arg0: i32) -> (i32, i32, i32) {
    %c0_i32 = arith.constant 0 : i32
    %c0_i32_0 = arith.constant 0 : i32
    %c0_i32_1 = arith.constant 0 : i32
    return %arg0, %c0_i32, %c0_i32_0 : i32, i32, i32
  }
  func.func @transform_1(%arg0: i32) -> (i32, i32, i32, i32) {
    %c0_i32 = arith.constant 0 : i32
    %c0_i32_0 = arith.constant 0 : i32
    %c0_i32_1 = arith.constant 0 : i32
    %c0_i32_2 = arith.constant 0 : i32
    return %arg0, %c0_i32, %c0_i32_0, %c0_i32_1 : i32, i32, i32, i32
  }
  func.func @transform_2(%arg0: i32) -> (i32, i32, i32, i32) {
    %c0_i32 = arith.constant 0 : i32
    %c0_i32_0 = arith.constant 0 : i32
    %c0_i32_1 = arith.constant 0 : i32
    %c0_i32_2 = arith.constant 0 : i32
    return %arg0, %c0_i32, %c0_i32_0, %c0_i32_1 : i32, i32, i32, i32
  }
  func.func @transform_3(%arg0: i32) -> (i32, i32, i32) {
    %c0_i32 = arith.constant 0 : i32
    %c0_i32_0 = arith.constant 0 : i32
    %c0_i32_1 = arith.constant 0 : i32
    return %arg0, %c0_i32, %c0_i32_0 : i32, i32, i32
  }
  func.func @transform_4(%arg0: i32) -> (i32, i32) {
    %c0_i32 = arith.constant 0 : i32
    %c0_i32_0 = arith.constant 0 : i32
    %c0_i32_1 = arith.constant 0 : i32
    return %c0_i32, %c0_i32_0 : i32, i32
  }
  func.func @transform_5(%arg0: i32) -> (i32, i32) {
    %c0_i32 = arith.constant 0 : i32
    %c0_i32_0 = arith.constant 0 : i32
    %c0_i32_1 = arith.constant 0 : i32
    return %c0_i32, %c0_i32_0 : i32, i32
  }
  func.func @transform_6(%arg0: i32) -> (i32, i32) {
    %c0_i32 = arith.constant 0 : i32
    %c0_i32_0 = arith.constant 0 : i32
    %c0_i32_1 = arith.constant 0 : i32
    return %c0_i32, %c0_i32_0 : i32, i32
  }
  func.func @transform_7(%arg0: i32) -> (i32, i32) {
    %c0_i32 = arith.constant 0 : i32
    %c0_i32_0 = arith.constant 0 : i32
    %c0_i32_1 = arith.constant 0 : i32
    return %c0_i32, %c0_i32_0 : i32, i32
  }
  func.func @transform_8(%arg0: i32) -> (i32, i32, i32) {
    %c0_i32 = arith.constant 0 : i32
    %c0_i32_0 = arith.constant 0 : i32
    %c0_i32_1 = arith.constant 0 : i32
    return %arg0, %c0_i32, %c0_i32_0 : i32, i32, i32
  }
}

</mosaic_0001>

<bundles_post_ra>
// kernel: tpu_custom_call.1
= control target key start
LH: loop header
LB: loop body
LE: loop exit
PB: predicated region body
PF: predicated region fallthrough
CT: control target
= control target key end

     0   :  { %13 = vsyncpa [#allocation3], 0  ;;  %s1885_s0 = inlined_call_operand.vmem [shape: f32[2,8,8], index: 0, kind: input, shape index: {}]   ;;  %s1886_s1 = inlined_call_operand.vmem [shape: s8[2,5,8,8], index: 1, kind: input, shape index: {}]   ;;  %s1887_s2 = inlined_call_operand.vmem [shape: bf16[2,8,8,4], index: 2, kind: input, shape index: {}]   ;;  %s1888_s3 = inlined_call_operand.hbm [shape: f32[2,8,32], index: 3, kind: input, shape index: {}]   ;;  %s1889_s4 = inlined_call_operand.vmem [shape: f32[20,96], index: 4, kind: input, shape index: {}]   ;;  %s1890_s5 = inlined_call_operand.vmem [shape: f32[32,96], index: 5, kind: input, shape index: {}]   ;;  %s1891_s6 = inlined_call_operand.vmem [shape: f32[1,96], index: 6, kind: input, shape index: {}]   ;;  %s1892_s7 = inlined_call_operand.vmem [shape: f32[1,96], index: 7, kind: input, shape index: {}]   ;;  %s1893_s8 = inlined_call_operand.hbm [shape: f32[2,8,32], index: 8, kind: output, shape index: {}]  }
   0x1   :  { %15 = vsyncpa [#allocation3 + $0x1], 0 }
   0x2   :  { %16 = vsyncpa [#allocation4], 0 }
   0x3   :  { %18 = vsyncpa [#allocation4 + $0x1], 0  ;;  %s1473_s27 = smov 0   ;;  %s1475_s28 = smov 0  }
   0x4   :  { %s1477_s29 = smov 0   ;;  %s1479_s30 = smov 0  }
   0x5 LB: > { %s1494_s9 = sadd.s32 4294967295, %s1414_s30   ;;  %s1171_s10 = sadd.s32 4294967294, %s1414_s30   ;;  %s1414_s30 = sphi %s1479_s30, %s1910_s30   ;;  %s1410_s29 = sphi %s1477_s29, %s1909_s29   ;;  %s1406_s28 = sphi %s1475_s28, %s1908_s28   ;;  %s1402_s27 = sphi %s1473_s27, %s1907_s27  }
   0x6   : > { %s1498_s11 = sadd.s32 1, %s1414_s30   ;;  %s109_s12 = sadd.s32 1, %s1410_s29 }
   0x7   : > { %s106_s13 = ssub.s32 %s1414_s30, %s1498_s11  ;;  %p116_p0 = scmp.ne.s32.totalorder %s1410_s29, %s1406_s28 }
   0x8   : > { %p107_p1 = scmp.eq.s32.totalorder %s106_s13, 0  ;;  %p117_p2 = scmp.eq.s32.totalorder %s1414_s30, 0 }
   0x9   : > { %p122_p3 = scmp.ne.s32.totalorder %s1406_s28, %s1402_s27  ;;  %p123_p4 = scmp.eq.s32.totalorder %s1494_s9, 0 }
   0xa   : > { %s1510_s14 = scalar_select %p107_p1, %s1410_s29, %s109_s12  }
   0xb   : > { %p1512_p5 = por %p117_p2, %p116_p0  ;;  %p1516_p6 = por %p123_p4, %p122_p3 }
   0xc   : > { %p230_p7 = scmp.eq.s32.totalorder %s1494_s9, 1  ;;  %p236_p8 = scmp.eq.s32.totalorder %s1171_s10, 1 }
   0xd   : > { %p1268_p10 = scmp.lt.s32.totalorder %s1414_s30, 2  ;;  %s291_s19 = sand.u32 1, %s1410_s29  }
   0xe   : > { %p1523_p11 = por %p230_p7, %p116_p0  ;;  %p1527_p12 = por %p236_p8, %p122_p3 }
   0xf   : > { %s1175_s20 = sshll.u32 %s1414_s30, 7  ;;  %s1174_s21 = sshll.u32 %s291_s19, 3 }
  0x10   : > { %s1898_s17 = scalar_select %p1523_p11, 1, 0 }
  0x11   : > { %s1899_s18 = scalar_select %p1527_p12, 1, 0 }
  0x12   : > { %s1536_s24 = scalar_lea.hbm %s1888_s3, %s1175_s20  ;;  %s295_s25 = scalar_lea.vmem [#allocation2], %s1174_s21 }
  0x13   : > { %s302_s26 = sshll.u32 %s295_s25, 4  ;;  %p1540_p13 = pnand %p1268_p10, %p1512_p5  ;;  %s1544_s26 = int_to_ptr.vmem [resolvable:$true] %s302_s26 }
  0x14   : > { %s292_s12 = scalar_lea.sflag [#allocation3], %s291_s19  ;;  %s1318_s13 = scalar_lea.hbm %s1536_s24, 128 }
  0x15   : > { %p1319_p2 = scmp.ne.s32.totalorder %s1536_s24, %s1318_s13  ;;  %p1320_p3 = pneg %p1540_p13 }
  0x16   : > { %s1323_s21 = scalar_lea.hbm %s1888_s3, 256  ;;  %p1324_p5 = scmp.lt.u32.totalorder %s1536_s24, %s1888_s3 }
  0x17   : > { %p1321_p4 = pnand %p1320_p3, %p1319_p2  ;;  %p1325_p8 = scmp.lt.u32.totalorder %s1323_s21, %s1318_s13 }
  0x18   : > { %p1327_p9 = scmp.lt.u32.totalorder %s1318_s13, %s1536_s24 }
  0x19   : > { %p1322_p7 = pneg %p1321_p4  ;;  %p1326_p10 = por %p1325_p8, %p1324_p5 }
  0x1b   : > { %p1328_p0 = por %p1327_p9, %p1326_p10 }
  0x1d   : > { %p1329_p1 = pnand %p1328_p0, %p1322_p7 }
  0x1f   : > { %1332 = shalt.err (!%p1329_p1)
}
  0x20   : > { %s1333_s19 = scalar_lea.vmem %s1544_s26, 128  ;;  %s1416_s25 = smov [#allocation2]  }
  0x21   : > { %p1334_p2 = scmp.ne.s32.totalorder %s1544_s26, %s1333_s19  ;;  %s1338_s15 = sshll.u32 %s1416_s25, 4  ;;  %s1339_s15 = int_to_ptr.vmem [resolvable:$false] %s1338_s15 }
  0x22   : > { %s1340_s20 = scalar_lea.vmem %s1339_s15, 256  ;;  %p1341_p11 = scmp.lt.s32.totalorder %s1544_s26, %s1339_s15 }
  0x23   : > { %p1336_p4 = pnand %p1334_p2, %p1320_p3  ;;  %p1342_p5 = scmp.lt.s32.totalorder %s1340_s20, %s1333_s19 }
  0x25   : > { %p1337_p12 = pneg %p1336_p4  ;;  %p1343_p8 = por %p1342_p5, %p1341_p11 }
  0x27   : > { %p1344_p9 = pnand %p1343_p8, %p1337_p12 }
  0x29   : > { %1347 = shalt.err (!%p1344_p9)
}
  0x2a   : > { %1263 = dma.hbm_to_vmem [thread:$0]  (!%p1540_p13), %s1536_s24, 128, %s1544_s26, %s292_s12  }
  0x2b   : > { %p1901_p0 = scmp.lt.s32.totalorder %s1414_s30, 3  ;;  %p1902_p1 = scmp.ge.s32.totalorder %s1414_s30, 1 }
  0x2d   : > { %p308_p3 = pnand %p1902_p1, %p1901_p0 }
  0x2e   : > { %s1578_s13 = sand.u32 (!%p308_p3), 1, %s1406_s28  }
  0x2f   : > { %311 = sbr.rel (%p308_p3) target bundleno = 988 (0x3dc), region = 52  ;;  %s1895_s21 = sshll.u32 (!%p308_p3), %s1578_s13, 3 }
  0x30   : > { %s314_s22 = scalar_lea.sflag (!%p308_p3), [#allocation3], %s1578_s13  ;;  %s1584_s10 = scalar_lea.vmem (!%p308_p3), [#allocation2], %s1895_s21 }
  0x36   : > { %1393 = dma.done.wait (%p1516_p6), %s314_s22, 128  }
  0x37   : > { %1395 = vsyncadd (%p1516_p6), %s314_s22, 4294967168  ;;  %p364_p11 = scmp.lt.s32.totalorder %s1494_s9, 1  ;;  %v399_v0 = vlaneseq  ;;  %v932_v59 = vld [vmem:[%s1890_s5] sm:$0xff]  ;;  %v933_v60 = vld [vmem:[%s1890_s5 + $0x8] sm:$0xff]  ;;  %v1417_v62 = vmov 0.0|0.0   ;;  %vm1418_vm0 = vmmov 0  }
  0x38   : > { %v934_v61 = vld [vmem:[%s1890_s5 + $0x10] sm:$0xff]  ;;  %1249 = vmatprep.subr.bf16.mxu1 %v1417_v62  ;;  %v1250_v63 = vpack.c.bf16 %v933_v60, %v932_v59  ;;  %1246 = vmatprep.subr.bf16.mxu0 %v1417_v62  ;;  %vm943_vm1 = vcmask 261120   ;;  %vm463_vm2 = vcmask 31744   ;;  %vm858_vm3 = vcmask 1043456   ;;  %s1420_s19 = smov 4   ;;  %s1423_s15 = smov 12  }
  0x39   : > { %s1592_s24 = scalar_select %p364_p11, %s1494_s9, 1  ;;  %v1602_v1 = vshrl.u32 %v399_v0, 7  ;;  %v935_v0 = vld [vmem:[%s1890_s5 + $0x18] sm:$0xff]  ;;  %vm837_vm4 = vcmask 64512   ;;  %vm839_vm5 = vcmask 97280   ;;  %vm841_vm6 = vcmask 130048  }
  0x3a   : > { %1251 = vmatpush3.bf16.msra.mxu1 %v1250_v63  ;;  %vm854_vm7 = vcmask 162816   ;;  %s1194_s23 = sshll.u32 %s1494_s9, 7  ;;  %p1904_p12 = scmp.ne.s32.totalorder %s1898_s17, 0 }
  0x3b   : > { %s1179_s26 = sshll.u32 %s1592_s24, 3  ;;  %s1255_s12 = smul.u32 10, %s1592_s24  ;;  %v1605_v7 = vsub.s32 0, %v1602_v1  ;;  %v1612_v12 = vsub.s32 1, %v1602_v1  ;;  %v1619_v17 = vsub.s32 2, %v1602_v1  ;;  %v1642_v30 = vsub.s32 3, %v1602_v1  ;;  %1252 = vmatprep.subr.bf16.mxu1 %v1417_v62 }
  0x3c   : > { %s367_s25 = scalar_lea.vmem %s1885_s0, %s1179_s26  ;;  %v1653_v37 = vsub.s32 4, %v1602_v1  ;;  %v436_v44 = vsub.s32 5, %v1602_v1  ;;  %v443_v49 = vsub.s32 6, %v1602_v1  ;;  %v450_v54 = vsub.s32 7, %v1602_v1  ;;  %s1425_s26 = smov 32  }
  0x3d   : > { %s372_s21 = scalar_lea.vmem %s1886_s1, %s1255_s12  ;;  %v394_v6 = vld [vmem:[%s367_s25] sm:$0xff]  ;;  %v1419_v1 = vmov 0.0   ;;  %s1421_s25 = smov 8  }
  0x3e   : > { %v1184_v2 = vld [vmem:[%s372_s21] sm:$0xff]   ;;  %v1186_v14 = vld [vmem:[%s372_s21 + $0x8] sm:$0x3]  ;;  %1243 = vmatprep.mubr.msk.f32.mxu1 %vm1418_vm0, %v1419_v1  ;;  %1232 = vmatprep.mubr.msk.f32.mxu0 %vm1418_vm0, %v1419_v1  ;;  %s1426_s12 = smov 96   ;;  %s1427_s9 = smov [#allocation5]  }
  0x3f   : > { %v567_v3 = vunpack.c.2.s8 %v1184_v2  ;;  %v482_v4 = vunpack.c.1.s8 %v1184_v2  ;;  %v652_v5 = vunpack.c.3.s8 %v1184_v2  ;;  %v737_v21 = vunpack.c.0.s8 %v1186_v14  ;;  %s1352_s22 = sshll.u32 %s1427_s9, 4  ;;  %s1353_s22 = int_to_ptr.vmem [resolvable:$false] %s1352_s22 }
  0x40   : > { %v396_v33 = vunpack.c.0.s8 %v1184_v2  ;;  %v1253_v2 = vpack.c.bf16 %v935_v0, %v934_v61 }
  0x41   : > { %v568_v8 = vcvt.s32.f32 %v567_v3  ;;  %v483_v9 = vcvt.s32.f32 %v482_v4  ;;  %v653_v13 = vcvt.s32.f32 %v652_v5  ;;  %v738_v24 = vcvt.s32.f32 %v737_v21  ;;  %v1701_v5 = vld [vmem:[%s1584_s10] sm:$0xff]  ;;  %s1197_s10 = sshll.u32 %s1592_s24, 5  ;;  %s1424_s24 = smov 64  }
  0x42   : > { %v397_v34 = vcvt.s32.f32 %v396_v33  ;;  %1254 = vmatpush3.bf16.msra.mxu1 %v1253_v2  ;;  %s377_s16 = scalar_lea.vmem %s1887_s2, %s1197_s10  ;;  %s1422_s10 = smov 16  }
  0x43   : > { %v1607_v10 = vmul.f32 %v568_v8, %v394_v6  ;;  %v1609_v11 = vmul.f32 %v483_v9, %v394_v6  ;;  %v1625_v20 = vmul.f32 %v653_v13, %v394_v6  ;;  %v1635_v27 = vmul.f32 %v738_v24, %v394_v6 }
  0x44   : > { %v1655_v38 = vmul.f32 %v397_v34, %v394_v6 }
  0x45   : > { %v573_v15 = vrot.slane %v1607_v10, %v1605_v7  ;;  %v488_v16 = vrot.slane %v1609_v11, %v1605_v7  ;;  %v580_v18 = vrot.slane %v1607_v10, %v1612_v12  ;;  %v495_v19 = vrot.slane %v1609_v11, %v1612_v12  ;;  %1244 = vmatmul.mubr.msk.f32.vlgmr.msra.gmra.mrb[0].mxu1 %vm943_vm1, %v1701_v5 }
  0x46   : > { %v658_v22 = vrot.slane %v1625_v20, %v1605_v7  ;;  %v502_v23 = vrot.slane %v1609_v11, %v1619_v17  ;;  %v587_v25 = vrot.slane %v1607_v10, %v1619_v17  ;;  %v665_v26 = vrot.slane %v1625_v20, %v1612_v12 }
  0x47   : > { %575 = vbcast.lane.b32.xlu1 %v573_v15, 256  ;;  %490 = vbcast.lane.b32.xlu0 %v488_v16, 256  ;;  %v750_v28 = vrot.slane %v1635_v27, %v1612_v12  ;;  %v743_v29 = vrot.slane %v1635_v27, %v1605_v7  ;;  %v672_v31 = vrot.slane %v1625_v20, %v1619_v17 }
  0x48   : > { %v509_v32 = vrot.slane %v1609_v11, %v1642_v30  ;;  %v757_v35 = vrot.slane %v1635_v27, %v1619_v17  ;;  %v594_v36 = vrot.slane %v1607_v10, %v1642_v30  ;;  %v402_v39 = vrot.slane %v1655_v38, %v1605_v7 }
  0x49   : > { %v679_v40 = vrot.slane %v1625_v20, %v1642_v30  ;;  %v516_v41 = vrot.slane %v1609_v11, %v1653_v37  ;;  %v764_v42 = vrot.slane %v1635_v27, %v1642_v30  ;;  %v601_v43 = vrot.slane %v1607_v10, %v1653_v37 }
  0x4a   : > { %v686_v45 = vrot.slane %v1625_v20, %v1653_v37  ;;  %v523_v46 = vrot.slane %v1609_v11, %v436_v44  ;;  %v771_v47 = vrot.slane %v1635_v27, %v1653_v37  ;;  %v608_v48 = vrot.slane %v1607_v10, %v436_v44 }
  0x4b   : > { %582 = vbcast.lane.b32.xlu1 %v580_v18, 256  ;;  %497 = vbcast.lane.b32.xlu0 %v495_v19, 256  ;;  %v693_v50 = vrot.slane %v1625_v20, %v436_v44  ;;  %v530_v51 = vrot.slane %v1609_v11, %v443_v49  ;;  %v778_v52 = vrot.slane %v1635_v27, %v436_v44 }
  0x4c   : > { %v615_v53 = vrot.slane %v1607_v10, %v443_v49  ;;  %v700_v55 = vrot.slane %v1625_v20, %v443_v49  ;;  %v537_v56 = vrot.slane %v1609_v11, %v450_v54  ;;  %v785_v57 = vrot.slane %v1635_v27, %v443_v49 }
  0x4d   : > { %v622_v58 = vrot.slane %v1607_v10, %v450_v54  ;;  %v792_v3 = vrot.slane %v1635_v27, %v450_v54  ;;  %v707_v4 = vrot.slane %v1625_v20, %v450_v54  ;;  %v409_v6 = vrot.slane %v1655_v38, %v1612_v12 }
  0x4e   : > { %v416_v7 = vrot.slane %v1655_v38, %v1619_v17  ;;  %v423_v8 = vrot.slane %v1655_v38, %v1642_v30  ;;  %v430_v9 = vrot.slane %v1655_v38, %v1653_v37  ;;  %v437_v10 = vrot.slane %v1655_v38, %v436_v44 }
  0x4f   : > { %660 = vbcast.lane.b32.xlu1 %v658_v22, 256  ;;  %504 = vbcast.lane.b32.xlu0 %v502_v23, 256  ;;  %v444_v11 = vrot.slane %v1655_v38, %v443_v49  ;;  %v451_v12 = vrot.slane %v1655_v38, %v450_v54 }
  0x53   : > { %589 = vbcast.lane.b32.xlu1 %v587_v25, 256  ;;  %667 = vbcast.lane.b32.xlu0 %v665_v26, 256 }
  0x57   : > { %752 = vbcast.lane.b32.xlu1 %v750_v28, 256  ;;  %745 = vbcast.lane.b32.xlu0 %v743_v29, 256  ;;  %v1199_v29 = vld [vmem:[%s377_s16] sm:$0xff]  }
  0x58   : > { %v1720_v30 = vunpack.c.h.bf16 %v1199_v29 }
  0x5b   : > { %674 = vbcast.lane.b32.xlu1 %v672_v31, 256  ;;  %511 = vbcast.lane.b32.xlu0 %v509_v32, 256  ;;  %v1214_v31 = vld [vmem:[%s377_s16 + $0x8] sm:$0xff]   ;;  %v1722_v32 = vunpack.c.l.bf16 %v1199_v29 }
  0x5c   : > { %v1727_v37 = vunpack.c.h.bf16 %v1214_v31 }
  0x5f   : > { %759 = vbcast.lane.b32.xlu1 %v757_v35, 256  ;;  %596 = vbcast.lane.b32.xlu0 %v594_v36, 256  ;;  %v1724_v35 = vunpack.c.l.bf16 %v1214_v31 }
  0x63   : > { %681 = vbcast.lane.b32.xlu1 %v679_v40, 256  ;;  %518 = vbcast.lane.b32.xlu0 %v516_v41, 256  ;;  %v1215_v40 = vld [vmem:[%s377_s16 + $0x10] sm:$0xff]  }
  0x67   : > { %766 = vbcast.lane.b32.xlu1 %v764_v42, 256  ;;  %603 = vbcast.lane.b32.xlu0 %v601_v43, 256 }
  0x6b   : > { %688 = vbcast.lane.b32.xlu1 %v686_v45, 256  ;;  %525 = vbcast.lane.b32.xlu0 %v523_v46, 256  ;;  %v1216_v45 = vld [vmem:[%s377_s16 + $0x18] sm:$0xff]   ;;  %s1840_s16 = scalar_lea.hbm %s1893_s8, %s1194_s23 }
  0x6f   : > { %773 = vbcast.lane.b32.xlu1 %v771_v47, 256  ;;  %610 = vbcast.lane.b32.xlu0 %v608_v48, 256 }
  0x73   : > { %695 = vbcast.lane.b32.xlu1 %v693_v50, 256  ;;  %532 = vbcast.lane.b32.xlu0 %v530_v51, 256  ;;  %v1737_v50 = vunpack.c.l.bf16 %v1215_v40  ;;  %v1739_v51 = vunpack.c.h.bf16 %v1215_v40 }
  0x77   : > { %780 = vbcast.lane.b32.xlu1 %v778_v52, 256  ;;  %617 = vbcast.lane.b32.xlu0 %v615_v53, 256 }
  0x7b   : > { %702 = vbcast.lane.b32.xlu1 %v700_v55, 256  ;;  %539 = vbcast.lane.b32.xlu0 %v537_v56, 256 }
  0x7f   : > { %787 = vbcast.lane.b32.xlu1 %v785_v57, 256  ;;  %624 = vbcast.lane.b32.xlu0 %v622_v58, 256  ;;  %v1744_v57 = vunpack.c.l.bf16 %v1216_v45 }
  0x83   : > { %794 = vbcast.lane.b32.xlu1 %v792_v3, 256  ;;  %709 = vbcast.lane.b32.xlu0 %v707_v4, 256 }
  0x87   : > { %404 = vbcast.lane.b32.xlu0 %v402_v39, 256  ;;  %411 = vbcast.lane.b32.xlu1 %v409_v6, 256 }
  0x8b   : > { %418 = vbcast.lane.b32.xlu0 %v416_v7, 256  ;;  %425 = vbcast.lane.b32.xlu1 %v423_v8, 256 }
  0x8f   : > { %432 = vbcast.lane.b32.xlu0 %v430_v9, 256  ;;  %439 = vbcast.lane.b32.xlu1 %v437_v10, 256 }
  0x93   : > { %446 = vbcast.lane.b32.xlu0 %v444_v11, 256  ;;  %453 = vbcast.lane.b32.xlu1 %v451_v12, 256 }
  0xb9   : > { %v576_v13 = vpop.permute.xlu1 %575  ;;  %v491_v14 = vpop.permute.xlu0 %490 }
  0xba   : > { %v541_v38 = vmul.f32 %v1722_v32, %v491_v14  ;;  %v626_v43 = vmul.f32 %v1722_v32, %v576_v13 }
  0xbc   : > { %v549_v52 = vsel %vm463_vm2, %v541_v38, 0.0  ;;  %v634_v58 = vsel %vm463_vm2, %v626_v43, 0.0 }
  0xbd   : > { %v583_v15 = vpop.permute.xlu1 %582  ;;  %v498_v16 = vpop.permute.xlu0 %497 }
  0xbe   : > { %v542_v36 = vmul.f32 %v1720_v30, %v498_v16  ;;  %v627_v39 = vmul.f32 %v1720_v30, %v583_v15 }
  0xc0   : > { %v550_v46 = vsel %vm463_vm2, %v542_v36, 0.0  ;;  %v635_v53 = vsel %vm463_vm2, %v627_v39, 0.0 }
  0xc1   : > { %v661_v17 = vpop.permute.xlu1 %660  ;;  %v505_v18 = vpop.permute.xlu0 %504  ;;  %v551_v59 = vadd.f32 %v550_v46, %v549_v52  ;;  %v636_v3 = vadd.f32 %v635_v53, %v634_v58 }
  0xc2   : > { %v543_v44 = vmul.f32 %v1724_v35, %v505_v18  ;;  %v711_v54 = vmul.f32 %v1722_v32, %v661_v17 }
  0xc4   : > { %v552_v60 = vsel %vm463_vm2, %v543_v44, 0.0  ;;  %v719_v8 = vsel %vm463_vm2, %v711_v54, 0.0 }
  0xc5   : > { %v590_v19 = vpop.permute.xlu1 %589  ;;  %v668_v20 = vpop.permute.xlu0 %667  ;;  %v553_v9 = vadd.f32 %v552_v60, %v551_v59  ;;  %v846_v60 = vld [vmem:[%s1889_s4 + $0x10] sm:$0xf] }
  0xc6   : > { %v628_v47 = vmul.f32 %v1724_v35, %v590_v19  ;;  %v712_v48 = vmul.f32 %v1720_v30, %v668_v20 }
  0xc8   : > { %v637_v62 = vsel %vm463_vm2, %v628_v47, 0.0  ;;  %v720_v63 = vsel %vm463_vm2, %v712_v48, 0.0 }
  0xc9   : > { %v753_v21 = vpop.permute.xlu1 %752  ;;  %v746_v22 = vpop.permute.xlu0 %745  ;;  %v638_v12 = vadd.f32 %v637_v62, %v636_v3  ;;  %v721_v13 = vadd.f32 %v720_v63, %v719_v8 }
  0xca   : > { %v797_v61 = vmul.f32 %v1720_v30, %v753_v21  ;;  %v796_v0 = vmul.f32 %v1722_v32, %v746_v22 }
  0xcc   : > { %v805_v14 = vsel %vm463_vm2, %v797_v61, 0.0  ;;  %v804_v16 = vsel %vm463_vm2, %v796_v0, 0.0 }
  0xcd   : > { %v675_v23 = vpop.permute.xlu1 %674  ;;  %v512_v24 = vpop.permute.xlu0 %511 }
  0xce   : > { %v544_v49 = vmul.f32 %v1727_v37, %v512_v24  ;;  %v713_v2 = vmul.f32 %v1724_v35, %v675_v23  ;;  %v844_v24 = vld [vmem:[%s1889_s4] sm:$0xff] }
  0xd0   : > { %v554_v4 = vsel %vm463_vm2, %v544_v49, 0.0  ;;  %v722_v17 = vsel %vm463_vm2, %v713_v2, 0.0 }
  0xd1   : > { %v760_v25 = vpop.permute.xlu1 %759  ;;  %v597_v26 = vpop.permute.xlu0 %596  ;;  %v555_v18 = vadd.f32 %v554_v4, %v553_v9  ;;  %v723_v39 = vadd.f32 %v722_v17, %v721_v13 }
  0xd2   : > { %v629_v6 = vmul.f32 %v1727_v37, %v597_v26  ;;  %v798_v19 = vmul.f32 %v1724_v35, %v760_v25  ;;  %v845_v26 = vld [vmem:[%s1889_s4 + $0x8] sm:$0xff] }
  0xd3   : > { %v1247_v38 = vpack.c.bf16 %v845_v26, %v844_v24 }
  0xd4   : > { %v639_v20 = vsel %vm463_vm2, %v629_v6, 0.0  ;;  %v807_v43 = vsel %vm463_vm2, %v798_v19, 0.0 }
  0xd5   : > { %v682_v27 = vpop.permute.xlu1 %681  ;;  %v519_v28 = vpop.permute.xlu0 %518  ;;  %v640_v44 = vadd.f32 %v639_v20, %v638_v12  ;;  %1248 = vmatpush3.bf16.msra.mxu0 %v1247_v38 }
  0xd6   : > { %v545_v7 = vmul.f32 %v1737_v50, %v519_v28  ;;  %v714_v28 = vmul.f32 %v1727_v37, %v682_v27  ;;  %1230 = vmatprep.subr.mxu0 %v1419_v1 }
  0xd8   : > { %v556_v21 = vsel %vm463_vm2, %v545_v7, 0.0 }
  0xd9   : > { %v767_v33 = vpop.permute.xlu1 %766  ;;  %v604_v34 = vpop.permute.xlu0 %603  ;;  %v557_v46 = vadd.f32 %v556_v21, %v555_v18  ;;  %1231 = vmatpush3.msk.msra.mxu0 %vm858_vm3, %v846_v60 }
  0xda   : > { %v630_v22 = vmul.f32 %v1737_v50, %v604_v34  ;;  %v799_v25 = vmul.f32 %v1727_v37, %v767_v33  ;;  %v806_v34 = vadd.f32 %v805_v14, %v804_v16 }
  0xdc   : > { %v641_v27 = vsel %vm463_vm2, %v630_v22, 0.0  ;;  %v809_v52 = vsel %vm463_vm2, %v799_v25, 0.0  ;;  %v808_v1 = vadd.f32 %v807_v43, %v806_v34 }
  0xdd   : > { %v689_v41 = vpop.permute.xlu1 %688  ;;  %v526_v42 = vpop.permute.xlu0 %525  ;;  %v642_v61 = vadd.f32 %v641_v27, %v640_v44 }
  0xde   : > { %v546_v15 = vmul.f32 %v1739_v51, %v526_v42  ;;  %v1776_v42 = vunpack.c.h.bf16 %v1216_v45  ;;  %v715_v47 = vmul.f32 %v1737_v50, %v689_v41  ;;  %v724_v45 = vsel %vm463_vm2, %v714_v28, 0.0 }
  0xdf   : > { %v725_v6 = vadd.f32 %v724_v45, %v723_v39  ;;  %v810_v7 = vadd.f32 %v809_v52, %v808_v1 }
  0xe0   : > { %v558_v40 = vsel %vm463_vm2, %v546_v15, 0.0  ;;  %v726_v62 = vsel %vm463_vm2, %v715_v47, 0.0 }
  0xe1   : > { %v774_v55 = vpop.permute.xlu1 %773  ;;  %v611_v56 = vpop.permute.xlu0 %610  ;;  %v559_v53 = vadd.f32 %v558_v40, %v557_v46  ;;  %v727_v16 = vadd.f32 %v726_v62, %v725_v6 }
  0xe2   : > { %v631_v29 = vmul.f32 %v1739_v51, %v611_v56  ;;  %v800_v33 = vmul.f32 %v1737_v50, %v774_v55 }
  0xe4   : > { %v643_v54 = vsel %vm463_vm2, %v631_v29, 0.0  ;;  %v811_v0 = vsel %vm463_vm2, %v800_v33, 0.0 }
  0xe5   : > { %v696_v10 = vpop.permute.xlu1 %695  ;;  %v533_v11 = vpop.permute.xlu0 %532  ;;  %v644_v8 = vadd.f32 %v643_v54, %v642_v61  ;;  %v812_v17 = vadd.f32 %v811_v0, %v810_v7 }
  0xe6   : > { %v547_v23 = vmul.f32 %v1744_v57, %v533_v11  ;;  %v716_v58 = vmul.f32 %v1739_v51, %v696_v10 }
  0xe8   : > { %v560_v48 = vsel %vm463_vm2, %v547_v23, 0.0  ;;  %v728_v12 = vsel %vm463_vm2, %v716_v58, 0.0 }
  0xe9   : > { %v781_v31 = vpop.permute.xlu1 %780  ;;  %v618_v36 = vpop.permute.xlu0 %617  ;;  %v561_v63 = vadd.f32 %v560_v48, %v559_v53  ;;  %v729_v22 = vadd.f32 %v728_v12, %v727_v16 }
  0xea   : > { %v632_v49 = vmul.f32 %v1744_v57, %v618_v36  ;;  %v801_v59 = vmul.f32 %v1739_v51, %v781_v31 }
  0xec   : > { %v645_v2 = vsel %vm463_vm2, %v632_v49, 0.0  ;;  %v813_v13 = vsel %vm463_vm2, %v801_v59, 0.0 }
  0xed   : > { %v703_v56 = vpop.permute.xlu1 %702  ;;  %v540_v41 = vpop.permute.xlu0 %539  ;;  %v646_v18 = vadd.f32 %v645_v2, %v644_v8  ;;  %v814_v23 = vadd.f32 %v813_v13, %v812_v17 }
  0xee   : > { %v548_v55 = vmul.f32 %v1776_v42, %v540_v41  ;;  %v717_v3 = vmul.f32 %v1744_v57, %v703_v56 }
  0xf0   : > { %v562_v4 = vsel %vm463_vm2, %v548_v55, 0.0  ;;  %v730_v19 = vsel %vm463_vm2, %v717_v3, 0.0 }
  0xf1   : > { %v563_v9 = vadd.f32 %v562_v4, %v561_v63  ;;  %v788_v10 = vpop.permute.xlu1 %787  ;;  %v625_v11 = vpop.permute.xlu0 %624  ;;  %v731_v31 = vadd.f32 %v730_v19, %v729_v22 }
  0xf2   : > { %v802_v14 = vmul.f32 %v1744_v57, %v788_v10  ;;  %v633_v15 = vmul.f32 %v1776_v42, %v625_v11 }
  0xf3   : > { %821 = vrot.lane.b32.xlu0 %v563_v9, %s1420_s19  ;;  %s1903_s19 = sshll.u32 %s1578_s13, 3 }
  0xf4   : > { %v815_v20 = vsel %vm463_vm2, %v802_v14, 0.0  ;;  %v647_v21 = vsel %vm463_vm2, %v633_v15, 0.0  ;;  %v1187_v15 = vld [vmem:[%s1891_s6] ss:$0 sm:$0xff] }
  0xf5   : > { %v648_v24 = vadd.f32 %v647_v21, %v646_v18  ;;  %v795_v26 = vpop.permute.xlu1 %794  ;;  %v710_v28 = vpop.permute.xlu0 %709  ;;  %v816_v36 = vadd.f32 %v815_v20, %v814_v23 }
  0xf6   : > { %v803_v25 = vmul.f32 %v1776_v42, %v795_v26  ;;  %v718_v29 = vmul.f32 %v1776_v42, %v710_v28 }
  0xf7   : > { %825 = vrot.lane.b32.xlu1 %v648_v24, %s1421_s25  ;;  %s363_s25 = scalar_lea.vmem [#allocation5], %s1903_s19 }
  0xf8   : > { %v817_v38 = vsel %vm463_vm2, %v803_v25, 0.0  ;;  %v732_v34 = vsel %vm463_vm2, %v718_v29, 0.0 }
  0xf9   : > { %v818_v39 = vadd.f32 %v817_v38, %v816_v36  ;;  %v733_v40 = vadd.f32 %v732_v34, %v731_v31  ;;  %v405_v43 = vpop.permute.xlu0 %404  ;;  %v412_v44 = vpop.permute.xlu1 %411 }
  0xfa   : > { %v455_v46 = vmul.f32 %v1722_v32, %v405_v43  ;;  %v456_v47 = vmul.f32 %v1720_v30, %v412_v44 }
  0xfb   : > { %833 = vrot.lane.b32.xlu1 %v818_v39, %s1422_s10  ;;  %829 = vrot.lane.b32.xlu0 %v733_v40, %s1423_s15  ;;  %s1065_s10 = sshll.u32 %s363_s25, 4  ;;  %s1842_s10 = int_to_ptr.vmem [resolvable:$true] %s1065_s10 }
  0xfc   : > { %v464_v27 = vsel %vm463_vm2, %v455_v46, 0.0  ;;  %v465_v33 = vsel %vm463_vm2, %v456_v47, 0.0  ;;  %s1348_s21 = scalar_lea.vmem %s1842_s10, 128  ;;  %p1355_p10 = scmp.lt.s32.totalorder %s1842_s10, %s1353_s22 }
  0xfd   : > { %v466_v48 = vadd.f32 %v465_v33, %v464_v27  ;;  %v419_v49 = vpop.permute.xlu0 %418  ;;  %v426_v45 = vpop.permute.xlu1 %425  ;;  %p1349_p6 = scmp.ne.s32.totalorder %s1842_s10, %s1348_s21 }
  0xfe   : > { %v457_v52 = vmul.f32 %v1724_v35, %v419_v49  ;;  %v458_v53 = vmul.f32 %v1727_v37, %v426_v45 }
  0xff   : > { %p1350_p13 = pnand %p1349_p6, %p1904_p12 }
 0x100   : > { %v467_v54 = vsel %vm463_vm2, %v457_v52, 0.0  ;;  %v469_v32 = vsel %vm463_vm2, %v458_v53, 0.0 }
 0x101   : > { %v468_v30 = vadd.f32 %v467_v54, %v466_v48  ;;  %v433_v56 = vpop.permute.xlu0 %432  ;;  %v440_v41 = vpop.permute.xlu1 %439  ;;  %p1351_p7 = pneg %p1350_p13 }
 0x102   : > { %v459_v58 = vmul.f32 %v1737_v50, %v433_v56  ;;  %v460_v59 = vmul.f32 %v1739_v51, %v440_v41  ;;  %v1190_v51 = vld [vmem:[%s1892_s7] ss:$0 sm:$0xff] }
 0x103   : > { %v470_v55 = vadd.f32 %v469_v32, %v468_v30 }
 0x104   : > { %v471_v60 = vsel %vm463_vm2, %v459_v58, 0.0  ;;  %v473_v1 = vsel %vm463_vm2, %v460_v59, 0.0 }
 0x105   : > { %v472_v61 = vadd.f32 %v471_v60, %v470_v55  ;;  %v447_v35 = vpop.permute.xlu0 %446  ;;  %v454_v62 = vpop.permute.xlu1 %453 }
 0x106   : > { %v461_v37 = vmul.f32 %v1744_v57, %v447_v35  ;;  %v462_v63 = vmul.f32 %v1776_v42, %v454_v62 }
 0x107   : > { %v474_v0 = vadd.f32 %v473_v1, %v472_v61 }
 0x108   : > { %v475_v2 = vsel %vm463_vm2, %v461_v37, 0.0  ;;  %v477_v3 = vsel %vm463_vm2, %v462_v63, 0.0 }
 0x109   : > { %v476_v50 = vadd.f32 %v475_v2, %v474_v0 }
 0x10b   : > { %v478_v4 = vadd.f32 %v477_v3, %v476_v50 }
 0x118   : > { %v1013_v6 = vpop.f32.mrb[0].mxu1 }
 0x119   : > { %v1014_v7 = vadd.f32 %v1190_v51, %v1013_v6  ;;  %v1245_v8 = vpop.f32.mrb[1].mxu1 }
 0x11b   : > { %1025 = vrot.lane.b32.xlu0 %v1014_v7, %s1424_s24 }
 0x165   : > { %v822_v9 = vpop.permute.xlu0 %821 }
 0x166   : > { %v836_v42 = vsel %vm463_vm2, %v478_v4, %v822_v9 }
 0x169   : > { %v826_v57 = vpop.permute.xlu1 %825 }
 0x16a   : > { %v838_v10 = vsel %vm837_vm4, %v836_v42, %v826_v57 }
 0x16d   : > { %v834_v11 = vpop.permute.xlu1 %833  ;;  %v830_v12 = vpop.permute.xlu0 %829 }
 0x16e   : > { %v840_v13 = vsel %vm839_vm5, %v838_v10, %v830_v12 }
 0x16f   : > { %v842_v14 = vsel %vm841_vm6, %v840_v13, %v834_v11 }
 0x170   : > { %1233 = vmatmul.mubr.msk.f32.vlgmr.msra.gmra.mrb[0].mxu0 %vm854_vm7, %v842_v14 }
 0x18d   : > { %v1026_v23 = vpop.permute.xlu0 %1025 }
 0x243   : > { %v928_v16 = vpop.f32.mrb[0].mxu0 }
 0x244   : > { %v929_v17 = vadd.f32 %v1187_v15, %v928_v16  ;;  %v1234_v18 = vpop.f32.mrb[1].mxu0 }
 0x246   : > { %v1017_v19 = vadd.f32 %v1014_v7, %v929_v17 }
 0x248   : > { %v1192_v20 = vmul.f32 -1.442695, %v1017_v19 }
 0x24a   : > { %1312 = vpow2.f32 %v1192_v20 }
 0x254   : > { %v1313_v21 = vpop.eup %1312 }
 0x255   : > { %v1021_v22 = vadd.f32 1.0, %v1313_v21 }
 0x257   : > { %1314 = vrcp.f32 %v1021_v22 }
 0x261   : > { %v1315_v24 = vpop.eup %1314 }
 0x262   : > { %v1028_v26 = vmul.f32 %v1315_v24, %v1026_v23  ;;  %v1035_v36 = vsub.f32 1.0, %v1315_v24 }
 0x264   : > { %1030 = vrot.lane.b32.xlu1 %v1028_v26, %s1424_s24  ;;  %s1052_s24 = scalar_lea.sflag [#allocation4], %s1578_s13 }
 0x268   : > { %1041 = vrot.lane.b32.xlu1 %v1701_v5, %s1425_s26  ;;  %s1354_s26 = scalar_lea.vmem %s1353_s22, 256 }
 0x269   : > { %p1356_p2 = scmp.lt.s32.totalorder %s1354_s26, %s1348_s21 }
 0x26b   : > { %p1357_p4 = por %p1356_p2, %p1355_p10 }
 0x26d   : > { %p1358_p5 = pnand %p1357_p4, %p1351_p7 }
 0x2d6   : > { %v1031_v28 = vpop.permute.xlu1 %1030 }
 0x2d7   : > { %v1033_v25 = vadd.f32 %v1031_v28, %v929_v17 }
 0x2d9   : > { %1316 = vtanh.f32 %v1033_v25 }
 0x2da   : > { %v1042_v31 = vpop.permute.xlu1 %1041 }
 0x2db   : > { %v1044_v34 = vmul.f32 %v1315_v24, %v1042_v31 }
 0x2e3   : > { %v1317_v29 = vpop.eup %1316 }
 0x2e4   : > { %1037 = vrot.lane.b32.xlu0 %v1317_v29, %s1426_s12 }
 0x356   : > { %v1038_v38 = vpop.permute.xlu0 %1037 }
 0x357   : > { %v1040_v39 = vmul.f32 %v1038_v38, %v1035_v36 }
 0x359   : > { %v1045_v40 = vadd.f32 %v1044_v34, %v1040_v39 }
 0x35b   : > { %1047 = vrot.lane.b32.xlu0 %v1045_v40, %s1426_s12 }
 0x3cd   : > { %v1048_v5 = vpop.permute.xlu0 %1047 }
 0x3ce   : > { %1050 = vst.msk [vmem:[%s363_s25] sm:$0xff] %vm943_vm1, %v1048_v5 }
 0x3cf   : > { %1361 = shalt.err (!%p1358_p5)
}
 0x3d0   : > { %s1362_s13 = scalar_lea.hbm %s1840_s16, 128  ;;  %s1366_s19 = scalar_lea.hbm %s1893_s8, 256 }
 0x3d1   : > { %p1363_p8 = scmp.ne.s32.totalorder %s1840_s16, %s1362_s13  ;;  %p1367_p1 = scmp.lt.u32.totalorder %s1840_s16, %s1893_s8 }
 0x3d2   : > { %p1368_p3 = scmp.lt.u32.totalorder %s1366_s19, %s1362_s13  ;;  %p1370_p6 = scmp.lt.u32.totalorder %s1362_s13, %s1840_s16 }
 0x3d3   : > { %p1364_p9 = pnand %p1363_p8, %p1904_p12 }
 0x3d4   : > { %p1369_p11 = por %p1368_p3, %p1367_p1 }
 0x3d5   : > { %p1365_p0 = pneg %p1364_p9 }
 0x3d6   : > { %p1371_p13 = por %p1370_p6, %p1369_p11 }
 0x3d8   : > { %p1372_p7 = pnand %p1371_p13, %p1365_p0 }
 0x3da   : > { %1375 = shalt.err (!%p1372_p7)
}
 0x3db   : > { %1258 = dma.vmem_to_hbm [thread:$0]  (%p1904_p12), %s1842_s10, 128, %s1840_s16, %s1052_s24  }
 0x3dc PF: > { %s1077_s20 = sand.u32 1, %s1402_s27   ;;  %p1905_p10 = scmp.ne.s32.totalorder %s1899_s18, 0 }
 0x3dd   : > { %p1906_p2 = scmp.ge.s32.totalorder %s1414_s30, 2  ;;  %s1078_s21 = scalar_lea.sflag [#allocation4], %s1077_s20 }
 0x3df   : > { %p1265_p4 = pnand %p1906_p2, %p1905_p10 }
 0x3e1   : > { %1397 = dma.done.wait (!%p1265_p4), %s1078_s21, 128  }
 0x3e2   : > { %1399 = vsyncadd (!%p1265_p4), %s1078_s21, 4294967168  ;;  %p21_p5 = scmp.ge.s32.totalorder %s1498_s11, 4   ;;  %s1907_s27 = smov %s1406_s28 }
 0x3e3   : > { %s1908_s28 = smov %s1410_s29  ;;  %s1909_s29 = smov %s1510_s14 }
 0x3e4   : > { %s1910_s30 = smov %s1498_s11  ;;  %23 = sbr.rel (!%p21_p5) target bundleno = 5 (0x5), region = 110 }
 0x3eb   :  { %1083 = vsyncpa [#allocation3], 1 }
 0x3ec   :  { %1085 = vsyncpa [#allocation3 + $0x1], 1 }
 0x3ed   :  { %1086 = vsyncpa [#allocation4], 1 }
 0x3ee   :  { %1088 = vsyncpa [#allocation4 + $0x1], 1 }

</bundles_post_ra>
